<compile_context>
chip_gen: v7x
topology: tpu7x:2x2x1
jax: 0.10.0
libtpu: 0.0.40
codegen_flags: <defaults>
</compile_context>

<pallas_src>
import functools

import jax
import jax.numpy as jnp
from jax.experimental import pallas as pl
from jax.experimental.pallas import tpu as pltpu

EPS = 1e-5  # BatchNorm eps (matches nn.Module default)


def _flow_kernel(x0_hbm, h_ref, mask_ref,
                 W0_ref, b0_ref,
                 Wms_ref, bms_ref, Wmt_ref, bmt_ref,
                 Wos_ref, bos_ref, Wot_ref, bot_ref,
                 gamma_ref, lg_ref, beta_ref,
                 u_ref, ld_ref,
                 xin_ref, a_ref, bn_acc, copy_sem,
                 *, n_layers, n_rows):
    f32 = jnp.float32
    bf16 = jnp.bfloat16
    b = pl.program_id(0)
    D, Npad = u_ref.shape
    H = a_ref.shape[0] // 2
    has_pad = n_rows < Npad

    # ---- init carried state; seed u from HBM x0 (read exactly once) ----
    @pl.when(b == 0)
    def _():
        cp = pltpu.make_async_copy(x0_hbm, u_ref, copy_sem)
        cp.start()
        cp.wait()
        ld_ref[...] = jnp.zeros_like(ld_ref)
        bn_acc[...] = jnp.zeros_like(bn_acc)
        xin_ref[D:, :] = h_ref[...]          # conditioning half of [mx; h], once

    x = u_ref[...]                           # (D, Npad) carried flow state
    # per-block period mask from grid parity: even block -> base, odd -> 1-base
    pf = (b % 2).astype(f32)
    m = pf + (1.0 - 2.0 * pf) * mask_ref[...]          # (1, Npad)
    one_minus_m = 1.0 - m
    mx = x * m

    # ---- layer 0: one fused [s|t] matmul against shared [mx; h] ----
    xin_ref[:D, :] = mx.astype(bf16)
    z = jnp.dot(W0_ref[0], xin_ref[...], preferred_element_type=f32) + b0_ref[0]
    a_ref[:H, :] = jnp.tanh(z[:H]).astype(bf16)          # s path
    a_ref[H:, :] = jnp.maximum(z[H:], 0.0).astype(bf16)  # t path

    # ---- middle layers: two dense dots per layer (no block-diagonal zeros) ----
    for l in range(n_layers):
        zs = jnp.dot(Wms_ref[0, l], a_ref[:H, :],
                     preferred_element_type=f32) + bms_ref[0, l]
        zt = jnp.dot(Wmt_ref[0, l], a_ref[H:, :],
                     preferred_element_type=f32) + bmt_ref[0, l]
        a_ref[:H, :] = jnp.tanh(zs).astype(bf16)
        a_ref[H:, :] = jnp.maximum(zt, 0.0).astype(bf16)

    s = jnp.dot(Wos_ref[0], a_ref[:H, :], preferred_element_type=f32) + bos_ref[0]
    t = jnp.dot(Wot_ref[0], a_ref[H:, :], preferred_element_type=f32) + bot_ref[0]

    # ---- masked affine coupling ----
    x = mx + one_minus_m * (x - t) * jnp.exp(-s)
    ld_ref[...] = ld_ref[...] - one_minus_m * s

    # ---- BatchNorm (training mode, unbiased variance), two-pass stats ----
    if has_pad:
        valid = (jax.lax.broadcasted_iota(jnp.int32, (1, Npad), 1)
                 < n_rows).astype(f32)
        x = x * valid                  # zero pad columns (stats + inf safety)
    mean = jnp.sum(x, axis=1, keepdims=True) * (1.0 / n_rows)      # (D, 1)
    xc = x - mean
    if has_pad:
        xc = xc * valid
    var = jnp.sum(xc * xc, axis=1, keepdims=True) * (1.0 / (n_rows - 1.0))
    inv_std = jax.lax.rsqrt(var + EPS)
    u_ref[...] = gamma_ref[0] * (xc * inv_std) + beta_ref[0]
    # row-independent BN logdet term: accumulate in (D,1), broadcast once at end
    bn_acc[...] = bn_acc[...] + (lg_ref[0] - 0.5 * jnp.log(var + EPS))

    @pl.when(b == pl.num_programs(0) - 1)
    def _():
        ld_ref[...] = ld_ref[...] + bn_acc[...]


def periodnf_forward(x, h, params, *, n_blocks, n_layers, period):
    """x: (N, D) float32, h: (N, DH) float32. Returns (u, sum_log_abs_det_jac)."""
    N, D = x.shape
    DH = h.shape[1]
    assert N >= 2, "training-mode BatchNorm (unbiased var) needs at least 2 rows"
    (sW0h, sW0x, sb0, sWm, sbm, sWo, sbo,
     tW0h, tW0x, tb0, tWm, tbm, tWo, tbo, lg, beta) = params
    H = sW0h.shape[-1]
    f32, bf16 = jnp.float32, jnp.bfloat16
    Npad = ((N + 127) // 128) * 128                # lane-dense, unmasked stores

    T = lambda a: jnp.swapaxes(a, -1, -2)

    # layer-0 weights fused over the [s|t] output rows and the [mx; h] input cols
    W0 = jnp.concatenate(
        [jnp.concatenate([T(sW0x), T(sW0h)], axis=-1),
         jnp.concatenate([T(tW0x), T(tW0h)], axis=-1)],
        axis=-2).astype(bf16)                                   # (nb, 2H, D+DH)
    b0 = jnp.concatenate([T(sb0), T(tb0)], axis=-2)             # (nb, 2H, 1)

    # middle / output layers kept dense & separate (no block-diagonal zeros)
    Wms = T(sWm).reshape(n_blocks, n_layers, H, H).astype(bf16)
    bms = T(sbm).reshape(n_blocks, n_layers, H, 1)
    Wmt = T(tWm).reshape(n_blocks, n_layers, H, H).astype(bf16)
    bmt = T(tbm).reshape(n_blocks, n_layers, H, 1)
    Wos = T(sWo).astype(bf16)                                   # (nb, D, H)
    bos = T(sbo)                                                # (nb, D, 1)
    Wot = T(tWo).astype(bf16)
    bot = T(tbo)
    lgT = T(lg)                                                 # (nb, D, 1)
    gamma = jnp.exp(lgT)                                        # precomputed
    betaT = T(beta)

    # single base mask (row i -> base[i % D]); per-block flip done in-kernel
    base = gen_mask(period, D)
    mask = jnp.pad(base[jnp.arange(N) % D], (0, Npad - N))[None, :]   # (1, Npad)

    xT = jnp.pad(x.T.astype(f32), ((0, 0), (0, Npad - N)))            # (D, Npad)
    hT = jnp.pad(h.T, ((0, 0), (0, Npad - N))).astype(bf16)           # (DH, Npad)

    # ---- explicit VMEM budget -> scoped limit (floor 32 MiB, cap 96 MiB) ----
    resident = Npad * (4 * 2 * D            # u, ld (f32, resident outputs)
                       + 2 * DH             # h (bf16, resident input)
                       + 2 * (D + DH)       # [mx; h] scratch (bf16)
                       + 2 * 2 * H          # activation scratch (bf16)
                       + 4)                 # base mask (f32)
    temps = Npad * 4 * (2 * 2 * H + 6 * D)  # z/zs/zt/s/t/x/mx/xc f32 temporaries
    wbytes_blk = ((W0.size + Wms.size + Wmt.size + Wos.size + Wot.size) * 2
                  + (b0.size + bms.size + bmt.size + bos.size + bot.size
                     + gamma.size + lgT.size + betaT.size) * 4) // n_blocks
    est = resident + temps + 2 * wbytes_blk + (1 << 20)   # 2x: double-buffered
    vmem_limit = int(min(max(est, 32 * 2 ** 20), 96 * 2 ** 20))

    # ---- advisory cost estimate for the XLA scheduler ----
    mxu_flops = 2 * (2 * H * (D + DH) + n_layers * 2 * H * H + 2 * D * H)
    flops = int(n_blocks * Npad * (mxu_flops + 12 * D + 4 * H))
    transcendentals = int(n_blocks * Npad * ((n_layers + 1) * H + D))
    in_arrays = (xT, hT, mask, W0, b0, Wms, bms, Wmt, bmt, Wos, bos, Wot, bot,
                 gamma, lgT, betaT)
    bytes_accessed = int(sum(a.size * a.dtype.itemsize for a in in_arrays)
                         + 2 * D * Npad * 4)

    kernel = functools.partial(_flow_kernel, n_layers=n_layers, n_rows=N)

    uT, ldT = pl.pallas_call(
        kernel,
        grid=(n_blocks,),
        out_shape=(jax.ShapeDtypeStruct((D, Npad), f32),
                   jax.ShapeDtypeStruct((D, Npad), f32)),
        in_specs=[
            pl.BlockSpec(memory_space=pl.ANY),                          # x0 (HBM)
            pl.BlockSpec((DH, Npad), lambda b: (0, 0)),                 # h
            pl.BlockSpec((1, Npad), lambda b: (0, 0)),                  # base mask
            pl.BlockSpec((1, 2 * H, D + DH), lambda b: (b, 0, 0)),      # W0
            pl.BlockSpec((1, 2 * H, 1), lambda b: (b, 0, 0)),           # b0
            pl.BlockSpec((1, n_layers, H, H), lambda b: (b, 0, 0, 0)),  # Wms
            pl.BlockSpec((1, n_layers, H, 1), lambda b: (b, 0, 0, 0)),  # bms
            pl.BlockSpec((1, n_layers, H, H), lambda b: (b, 0, 0, 0)),  # Wmt
            pl.BlockSpec((1, n_layers, H, 1), lambda b: (b, 0, 0, 0)),  # bmt
            pl.BlockSpec((1, D, H), lambda b: (b, 0, 0)),               # Wos
            pl.BlockSpec((1, D, 1), lambda b: (b, 0, 0)),               # bos
            pl.BlockSpec((1, D, H), lambda b: (b, 0, 0)),               # Wot
            pl.BlockSpec((1, D, 1), lambda b: (b, 0, 0)),               # bot
            pl.BlockSpec((1, D, 1), lambda b: (b, 0, 0)),               # gamma
            pl.BlockSpec((1, D, 1), lambda b: (b, 0, 0)),               # log_gamma
            pl.BlockSpec((1, D, 1), lambda b: (b, 0, 0)),               # beta
        ],
        out_specs=(pl.BlockSpec((D, Npad), lambda b: (0, 0)),
                   pl.BlockSpec((D, Npad), lambda b: (0, 0))),
        scratch_shapes=[pltpu.VMEM((D + DH, Npad), bf16),   # [mx; h] layer-0 input
                        pltpu.VMEM((2 * H, Npad), bf16),    # tanh/relu activations
                        pltpu.VMEM((D, 1), jnp.float32),    # BN logdet accumulator
                        pltpu.SemaphoreType.DMA],           # x0 seed DMA
        compiler_params=pltpu.CompilerParams(
            dimension_semantics=("arbitrary",),
            vmem_limit_bytes=vmem_limit),
        cost_estimate=pl.CostEstimate(flops=flops,
                                      transcendentals=transcendentals,
                                      bytes_accessed=bytes_accessed),
    )(xT, hT, mask, W0, b0, Wms, bms, Wmt, bmt, Wos, bos, Wot, bot,
      gamma, lgT, betaT)

    # drop padding, return in the module's (N, D) orientation
    return uT[:, :N].T, ldT[:, :N].T


def gen_mask(period, length):
    pattern = [0] * period + [1] * period
    mask = pattern * (length // (period * 2))
    mask += pattern[: length % (period * 2)]
    return jnp.asarray(mask, dtype=jnp.float32)


def make_params(key, n_blocks, D, H, n_layers, DH):
    """Deterministic synthetic init mirroring the module's __init__ shapes."""
    def init_linear(k, fan_in, fan_out):
        k1, k2 = jax.random.split(k)
        bound = 1.0 / float(fan_in) ** 0.5
        W = jax.random.uniform(k1, (fan_in, fan_out), jnp.float32, -bound, bound)
        b = jax.random.uniform(k2, (1, fan_out), jnp.float32, -bound, bound)
        return W, b

    sW0h, sW0x, sb0 = [], [], []
    sWm, sbm, sWo, sbo = [], [], [], []
    for _ in range(n_blocks):
        key, k0, ko = jax.random.split(key, 3)
        W0, b0 = init_linear(k0, DH + D, H)        # cat([h, mx]) order: h first
        sW0h.append(W0[:DH]); sW0x.append(W0[DH:]); sb0.append(b0)
        for _ in range(n_layers):
            key, km = jax.random.split(key)
            Wm, bm = init_linear(km, H, H)
            sWm.append(Wm); sbm.append(bm)
        Wo, bo = init_linear(ko, H, D)
        sWo.append(Wo); sbo.append(bo)

    sW0h, sW0x, sb0 = jnp.stack(sW0h), jnp.stack(sW0x), jnp.stack(sb0)
    sWm, sbm = jnp.stack(sWm), jnp.stack(sbm)
    sWo, sbo = jnp.stack(sWo), jnp.stack(sbo)
    # t_net is a deepcopy of s_net at init -> identical initial Linear weights.
    lg = jnp.zeros((n_blocks, 1, D), jnp.float32)    # BatchNorm log_gamma
    beta = jnp.zeros((n_blocks, 1, D), jnp.float32)  # BatchNorm beta
    return (sW0h, sW0x, sb0, sWm, sbm, sWo, sbo,
            sW0h, sW0x, sb0, sWm, sbm, sWo, sbo, lg, beta)


def reference_forward(x, h, params, n_blocks, n_layers, period):
    """Pure-JAX reference of the same math (row-major, unfused weights).
    Matmul inputs are cast to bf16 (f32 accumulation) to mirror the kernel's
    MXU precision, so the comparison isolates fusion/layout/grid logic."""
    (sW0h, sW0x, sb0, sWm, sbm, sWo, sbo,
     tW0h, tW0x, tb0, tWm, tbm, tWo, tbo, lg, beta) = params
    N, D = x.shape
    bf = lambda a: a.astype(jnp.bfloat16)
    dot = lambda a, w: jnp.dot(bf(a), bf(w), preferred_element_type=jnp.float32)

    base = gen_mask(period, D)
    rows = base[jnp.arange(N) % D]
    sum_ld = jnp.zeros_like(x)
    for b in range(n_blocks):
        m = (rows if b % 2 == 0 else 1.0 - rows)[:, None]          # (N, 1)
        mx = x * m
        z = dot(h, sW0h[b]) + dot(mx, sW0x[b]) + sb0[b]
        for l in range(n_layers):
            z = dot(jnp.tanh(z), sWm[b * n_layers + l]) + sbm[b * n_layers + l]
        s = dot(jnp.tanh(z), sWo[b]) + sbo[b]
        zt = dot(h, tW0h[b]) + dot(mx, tW0x[b]) + tb0[b]
        for l in range(n_layers):
            zt = dot(jnp.maximum(zt, 0.0), tWm[b * n_layers + l]) + tbm[b * n_layers + l]
        t = dot(jnp.maximum(zt, 0.0), tWo[b]) + tbo[b]
        x = mx + (1.0 - m) * (x - t) * jnp.exp(-s)
        sum_ld = sum_ld - (1.0 - m) * s
        mean = x.mean(0, keepdims=True)
        var = ((x - mean) ** 2).sum(0, keepdims=True) / (N - 1)     # unbiased
        x = jnp.exp(lg[b]) * (x - mean) / jnp.sqrt(var + EPS) + beta[b]
        sum_ld = sum_ld + (lg[b] - 0.5 * jnp.log(var + EPS))
    return x, sum_ld


if __name__ == "__main__":
    # small shapes consistent with the module
    N, D, H, DH = 16, 8, 32, 4          # batch, input_size, hidden_size, cond_label_size
    n_blocks, n_layers, period = 2, 1, 2

    key = jax.random.PRNGKey(0)
    kx, kh, kp = jax.random.split(key, 3)
    x = jax.random.normal(kx, (N, D), jnp.float32)
    h = jax.random.normal(kh, (N, DH), jnp.float32)
    params = make_params(kp, n_blocks, D, H, n_layers, DH)

    u, logdet = periodnf_forward(x, h, params, n_blocks=n_blocks,
                                 n_layers=n_layers, period=period)
    jax.block_until_ready((u, logdet))

    u_ref, ld_ref = reference_forward(x, h, params, n_blocks, n_layers, period)
    assert jnp.allclose(u, u_ref, atol=2e-2, rtol=2e-2), \
        f"u mismatch: max abs err {jnp.max(jnp.abs(u - u_ref))}"
    assert jnp.allclose(logdet, ld_ref, atol=2e-2, rtol=2e-2), \
        f"logdet mismatch: max abs err {jnp.max(jnp.abs(logdet - ld_ref))}"

    print("KERNEL_OK")
</pallas_src>

<mosaic_0001>
module attributes {stable_mosaic.version = 11 : i64} {
  func.func @_flow_kernel(%arg0: i32, %arg1: memref<8x128xf32, #tpu.memory_space<any>>, %arg2: memref<4x128xbf16, #tpu.memory_space<vmem>>, %arg3: memref<1x128xf32, #tpu.memory_space<vmem>>, %arg4: memref<1x64x12xbf16, #tpu.memory_space<vmem>>, %arg5: memref<1x64x1xf32, #tpu.memory_space<vmem>>, %arg6: memref<1x1x32x32xbf16, #tpu.memory_space<vmem>>, %arg7: memref<1x1x32x1xf32, #tpu.memory_space<vmem>>, %arg8: memref<1x1x32x32xbf16, #tpu.memory_space<vmem>>, %arg9: memref<1x1x32x1xf32, #tpu.memory_space<vmem>>, %arg10: memref<1x8x32xbf16, #tpu.memory_space<vmem>>, %arg11: memref<1x8x1xf32, #tpu.memory_space<vmem>>, %arg12: memref<1x8x32xbf16, #tpu.memory_space<vmem>>, %arg13: memref<1x8x1xf32, #tpu.memory_space<vmem>>, %arg14: memref<1x8x1xf32, #tpu.memory_space<vmem>>, %arg15: memref<1x8x1xf32, #tpu.memory_space<vmem>>, %arg16: memref<1x8x1xf32, #tpu.memory_space<vmem>>, %arg17: memref<8x128xf32, #tpu.memory_space<vmem>>, %arg18: memref<8x128xf32, #tpu.memory_space<vmem>>, %arg19: memref<12x128xbf16, #tpu.memory_space<vmem>>, %arg20: memref<64x128xbf16, #tpu.memory_space<vmem>>, %arg21: memref<8x1xf32, #tpu.memory_space<vmem>>, %arg22: memref<!tpu.dma_semaphore, #tpu.memory_space<semaphore_mem>>) attributes {dimension_semantics = [#tpu.dimension_semantics<arbitrary>], iteration_bounds = array<i64: 2>, scalar_prefetch = 0 : i64, scratch_operands = 4 : i64, tpu.core_type = #tpu.core_type<tc>, window_params = [{}, {pipeline_mode = #tpu.pipeline_mode<synchronous>, transform_indices = @transform_1, window_bounds = array<i64: 4, 128>}, {pipeline_mode = #tpu.pipeline_mode<synchronous>, transform_indices = @transform_2, window_bounds = array<i64: 1, 128>}, {transform_indices = @transform_3, window_bounds = array<i64: 1, 64, 12>}, {transform_indices = @transform_4, window_bounds = array<i64: 1, 64, 1>}, {transform_indices = @transform_5, window_bounds = array<i64: 1, 1, 32, 32>}, {transform_indices = @transform_6, window_bounds = array<i64: 1, 1, 32, 1>}, {transform_indices = @transform_7, window_bounds = array<i64: 1, 1, 32, 32>}, {transform_indices = @transform_8, window_bounds = array<i64: 1, 1, 32, 1>}, {transform_indices = @transform_9, window_bounds = array<i64: 1, 8, 32>}, {transform_indices = @transform_10, window_bounds = array<i64: 1, 8, 1>}, {transform_indices = @transform_11, window_bounds = array<i64: 1, 8, 32>}, {transform_indices = @transform_12, window_bounds = array<i64: 1, 8, 1>}, {transform_indices = @transform_13, window_bounds = array<i64: 1, 8, 1>}, {transform_indices = @transform_14, window_bounds = array<i64: 1, 8, 1>}, {transform_indices = @transform_15, window_bounds = array<i64: 1, 8, 1>}, {pipeline_mode = #tpu.pipeline_mode<synchronous>, transform_indices = @transform_16, window_bounds = array<i64: 8, 128>}, {pipeline_mode = #tpu.pipeline_mode<synchronous>, transform_indices = @transform_17, window_bounds = array<i64: 8, 128>}]} {
    %c0_i32 = arith.constant 0 : i32
    %0 = arith.cmpi eq, %arg0, %c0_i32 : i32
    %1 = arith.extui %0 : i1 to i32
    %c0_i32_0 = arith.constant 0 : i32
    %2 = arith.cmpi ne, %1, %c0_i32_0 : i32
    scf.if %2 {
      tpu.enqueue_dma source(%arg1 : memref<8x128xf32, #tpu.memory_space<any>>) target(%arg17 : memref<8x128xf32, #tpu.memory_space<vmem>>) target_semaphore(%arg22 : memref<!tpu.dma_semaphore, #tpu.memory_space<semaphore_mem>>)
      tpu.wait_dma2 semaphore(%arg22 : memref<!tpu.dma_semaphore, #tpu.memory_space<semaphore_mem>>) src(%arg1 : memref<8x128xf32, #tpu.memory_space<any>>) dst(%arg17 : memref<8x128xf32, #tpu.memory_space<vmem>>)
      %cst_99 = arith.constant 0.000000e+00 : f32
      %145 = vector.broadcast %cst_99 : f32 to vector<8x128xf32>
      %c0_100 = arith.constant 0 : index
      %c0_101 = arith.constant 0 : index
      %146 = vector.load %arg18[%c0_100, %c0_101] : memref<8x128xf32, #tpu.memory_space<vmem>>, vector<8x128xf32>
      tpu.vector_store %arg18[%c0_100, %c0_101], %145 {strides = array<i32>} : memref<8x128xf32, #tpu.memory_space<vmem>>, vector<8x128xf32>,
      %cst_102 = arith.constant 0.000000e+00 : f32
      %147 = vector.broadcast %cst_102 : f32 to vector<8x1xf32>
      %c0_103 = arith.constant 0 : index
      %c0_104 = arith.constant 0 : index
      %148 = vector.load %arg21[%c0_103, %c0_104] : memref<8x1xf32, #tpu.memory_space<vmem>>, vector<8x1xf32>
      tpu.vector_store %arg21[%c0_103, %c0_104], %147 {strides = array<i32>} : memref<8x1xf32, #tpu.memory_space<vmem>>, vector<8x1xf32>,
      %c0_105 = arith.constant 0 : index
      %c0_106 = arith.constant 0 : index
      %149 = vector.load %arg2[%c0_105, %c0_106] : memref<4x128xbf16, #tpu.memory_space<vmem>>, vector<4x128xbf16>
      %c8 = arith.constant 8 : index
      %c0_107 = arith.constant 0 : index
      %150 = vector.load %arg19[%c8, %c0_107] : memref<12x128xbf16, #tpu.memory_space<vmem>>, vector<4x128xbf16>
      tpu.vector_store %arg19[%c8, %c0_107], %149 {strides = array<i32>} : memref<12x128xbf16, #tpu.memory_space<vmem>>, vector<4x128xbf16>,
    } else {
    }
    %c0 = arith.constant 0 : index
    %c0_1 = arith.constant 0 : index
    %3 = vector.load %arg17[%c0, %c0_1] : memref<8x128xf32, #tpu.memory_space<vmem>>, vector<8x128xf32>
    %c2_i32 = arith.constant 2 : i32
    %c0_i32_2 = arith.constant 0 : i32
    %4 = arith.cmpi eq, %c2_i32, %c0_i32_2 : i32
    %c1_i32 = arith.constant 1 : i32
    %5 = arith.select %4, %c1_i32, %c2_i32 : i32
    %6 = arith.remsi %arg0, %5 : i32
    %c0_i32_3 = arith.constant 0 : i32
    %7 = arith.cmpi ne, %6, %c0_i32_3 : i32
    %c0_i32_4 = arith.constant 0 : i32
    %8 = arith.cmpi slt, %6, %c0_i32_4 : i32
    %c0_i32_5 = arith.constant 0 : i32
    %9 = arith.cmpi slt, %5, %c0_i32_5 : i32
    %10 = arith.xori %8, %9 : i1
    %11 = arith.andi %10, %7 : i1
    %12 = arith.addi %6, %5 : i32
    %13 = arith.select %11, %12, %6 : i32
    %14 = arith.sitofp %13 : i32 to f32
    %cst = arith.constant 2.000000e+00 : f32
    %15 = arith.mulf %cst, %14 : f32
    %cst_6 = arith.constant 1.000000e+00 : f32
    %16 = arith.subf %cst_6, %15 : f32
    %c0_7 = arith.constant 0 : index
    %c0_8 = arith.constant 0 : index
    %17 = vector.load %arg3[%c0_7, %c0_8] : memref<1x128xf32, #tpu.memory_space<vmem>>, vector<1x128xf32>
    %18 = vector.broadcast %16 : f32 to vector<1x128xf32>
    %19 = arith.mulf %18, %17 : vector<1x128xf32>
    %20 = vector.broadcast %14 : f32 to vector<1x128xf32>
    %21 = arith.addf %20, %19 : vector<1x128xf32>
    %cst_9 = arith.constant 1.000000e+00 : f32
    %22 = vector.broadcast %cst_9 : f32 to vector<1x128xf32>
    %23 = arith.subf %22, %21 : vector<1x128xf32>
    %24 = vector.broadcast %21 : vector<1x128xf32> to vector<8x128xf32>
    %25 = arith.mulf %3, %24 : vector<8x128xf32>
    %26 = arith.truncf %25 : vector<8x128xf32> to vector<8x128xbf16>
    %c0_10 = arith.constant 0 : index
    %c0_11 = arith.constant 0 : index
    %27 = vector.load %arg19[%c0_10, %c0_11] : memref<12x128xbf16, #tpu.memory_space<vmem>>, vector<8x128xbf16>
    tpu.vector_store %arg19[%c0_10, %c0_11], %26 {strides = array<i32>} : memref<12x128xbf16, #tpu.memory_space<vmem>>, vector<8x128xbf16>,
    %c0_12 = arith.constant 0 : index
    %c0_13 = arith.constant 0 : index
    %c0_14 = arith.constant 0 : index
    %28 = vector.load %arg4[%c0_12, %c0_13, %c0_14] : memref<1x64x12xbf16, #tpu.memory_space<vmem>>, vector<1x64x12xbf16>
    %29 = vector.shape_cast %28 : vector<1x64x12xbf16> to vector<64x12xbf16>
    %c0_15 = arith.constant 0 : index
    %c0_16 = arith.constant 0 : index
    %30 = vector.load %arg19[%c0_15, %c0_16] : memref<12x128xbf16, #tpu.memory_space<vmem>>, vector<12x128xbf16>
    %cst_17 = arith.constant dense<0.000000e+00> : vector<64x128xf32>
    %31 = tpu.matmul %29, %30, %cst_17 {dimension_numbers = #tpu.dot_dimension_numbers<[1], [0], [0], [1], [0, 0, 1, 1], [], []>} : vector<64x12xbf16>, vector<12x128xbf16>, vector<64x128xf32> -> vector<64x128xf32>
    %c0_18 = arith.constant 0 : index
    %c0_19 = arith.constant 0 : index
    %c0_20 = arith.constant 0 : index
    %32 = vector.load %arg5[%c0_18, %c0_19, %c0_20] : memref<1x64x1xf32, #tpu.memory_space<vmem>>, vector<1x64x1xf32>
    %33 = vector.shape_cast %32 : vector<1x64x1xf32> to vector<64x1xf32>
    %34 = vector.broadcast %33 : vector<64x1xf32> to vector<64x128xf32>
    %35 = arith.addf %31, %34 : vector<64x128xf32>
    %36 = vector.extract_strided_slice %35 {offsets = [0, 0], sizes = [32, 128], strides = [1, 1]} : vector<64x128xf32> to vector<32x128xf32>
    %37 = math.tanh %36 : vector<32x128xf32>
    %38 = arith.truncf %37 : vector<32x128xf32> to vector<32x128xbf16>
    %c0_21 = arith.constant 0 : index
    %c0_22 = arith.constant 0 : index
    %39 = vector.load %arg20[%c0_21, %c0_22] : memref<64x128xbf16, #tpu.memory_space<vmem>>, vector<32x128xbf16>
    tpu.vector_store %arg20[%c0_21, %c0_22], %38 {strides = array<i32>} : memref<64x128xbf16, #tpu.memory_space<vmem>>, vector<32x128xbf16>,
    %40 = vector.extract_strided_slice %35 {offsets = [32, 0], sizes = [32, 128], strides = [1, 1]} : vector<64x128xf32> to vector<32x128xf32>
    %cst_23 = arith.constant 0.000000e+00 : f32
    %41 = vector.broadcast %cst_23 : f32 to vector<32x128xf32>
    %42 = arith.maximumf %40, %41 : vector<32x128xf32>
    %43 = arith.truncf %42 : vector<32x128xf32> to vector<32x128xbf16>
    %c32 = arith.constant 32 : index
    %c0_24 = arith.constant 0 : index
    %44 = vector.load %arg20[%c32, %c0_24] : memref<64x128xbf16, #tpu.memory_space<vmem>>, vector<32x128xbf16>
    tpu.vector_store %arg20[%c32, %c0_24], %43 {strides = array<i32>} : memref<64x128xbf16, #tpu.memory_space<vmem>>, vector<32x128xbf16>,
    %c0_25 = arith.constant 0 : index
    %c0_26 = arith.constant 0 : index
    %c0_27 = arith.constant 0 : index
    %c0_28 = arith.constant 0 : index
    %45 = vector.load %arg6[%c0_25, %c0_26, %c0_27, %c0_28] : memref<1x1x32x32xbf16, #tpu.memory_space<vmem>>, vector<1x1x32x32xbf16>
    %46 = vector.shape_cast %45 : vector<1x1x32x32xbf16> to vector<32x32xbf16>
    %c0_29 = arith.constant 0 : index
    %c0_30 = arith.constant 0 : index
    %47 = vector.load %arg20[%c0_29, %c0_30] : memref<64x128xbf16, #tpu.memory_space<vmem>>, vector<32x128xbf16>
    %cst_31 = arith.constant dense<0.000000e+00> : vector<32x128xf32>
    %48 = tpu.matmul %46, %47, %cst_31 {dimension_numbers = #tpu.dot_dimension_numbers<[1], [0], [0], [1], [0, 0, 1, 1], [], []>} : vector<32x32xbf16>, vector<32x128xbf16>, vector<32x128xf32> -> vector<32x128xf32>
    %c0_32 = arith.constant 0 : index
    %c0_33 = arith.constant 0 : index
    %c0_34 = arith.constant 0 : index
    %c0_35 = arith.constant 0 : index
    %49 = vector.load %arg7[%c0_32, %c0_33, %c0_34, %c0_35] : memref<1x1x32x1xf32, #tpu.memory_space<vmem>>, vector<1x1x32x1xf32>
    %50 = vector.shape_cast %49 : vector<1x1x32x1xf32> to vector<32x1xf32>
    %51 = vector.broadcast %50 : vector<32x1xf32> to vector<32x128xf32>
    %52 = arith.addf %48, %51 : vector<32x128xf32>
    %c0_36 = arith.constant 0 : index
    %c0_37 = arith.constant 0 : index
    %c0_38 = arith.constant 0 : index
    %c0_39 = arith.constant 0 : index
    %53 = vector.load %arg8[%c0_36, %c0_37, %c0_38, %c0_39] : memref<1x1x32x32xbf16, #tpu.memory_space<vmem>>, vector<1x1x32x32xbf16>
    %54 = vector.shape_cast %53 : vector<1x1x32x32xbf16> to vector<32x32xbf16>
    %c32_40 = arith.constant 32 : index
    %c0_41 = arith.constant 0 : index
    %55 = vector.load %arg20[%c32_40, %c0_41] : memref<64x128xbf16, #tpu.memory_space<vmem>>, vector<32x128xbf16>
    %cst_42 = arith.constant dense<0.000000e+00> : vector<32x128xf32>
    %56 = tpu.matmul %54, %55, %cst_42 {dimension_numbers = #tpu.dot_dimension_numbers<[1], [0], [0], [1], [0, 0, 1, 1], [], []>} : vector<32x32xbf16>, vector<32x128xbf16>, vector<32x128xf32> -> vector<32x128xf32>
    %c0_43 = arith.constant 0 : index
    %c0_44 = arith.constant 0 : index
    %c0_45 = arith.constant 0 : index
    %c0_46 = arith.constant 0 : index
    %57 = vector.load %arg9[%c0_43, %c0_44, %c0_45, %c0_46] : memref<1x1x32x1xf32, #tpu.memory_space<vmem>>, vector<1x1x32x1xf32>
    %58 = vector.shape_cast %57 : vector<1x1x32x1xf32> to vector<32x1xf32>
    %59 = vector.broadcast %58 : vector<32x1xf32> to vector<32x128xf32>
    %60 = arith.addf %56, %59 : vector<32x128xf32>
    %61 = math.tanh %52 : vector<32x128xf32>
    %62 = arith.truncf %61 : vector<32x128xf32> to vector<32x128xbf16>
    %c0_47 = arith.constant 0 : index
    %c0_48 = arith.constant 0 : index
    %63 = vector.load %arg20[%c0_47, %c0_48] : memref<64x128xbf16, #tpu.memory_space<vmem>>, vector<32x128xbf16>
    tpu.vector_store %arg20[%c0_47, %c0_48], %62 {strides = array<i32>} : memref<64x128xbf16, #tpu.memory_space<vmem>>, vector<32x128xbf16>,
    %cst_49 = arith.constant 0.000000e+00 : f32
    %64 = vector.broadcast %cst_49 : f32 to vector<32x128xf32>
    %65 = arith.maximumf %60, %64 : vector<32x128xf32>
    %66 = arith.truncf %65 : vector<32x128xf32> to vector<32x128xbf16>
    %c32_50 = arith.constant 32 : index
    %c0_51 = arith.constant 0 : index
    %67 = vector.load %arg20[%c32_50, %c0_51] : memref<64x128xbf16, #tpu.memory_space<vmem>>, vector<32x128xbf16>
    tpu.vector_store %arg20[%c32_50, %c0_51], %66 {strides = array<i32>} : memref<64x128xbf16, #tpu.memory_space<vmem>>, vector<32x128xbf16>,
    %c0_52 = arith.constant 0 : index
    %c0_53 = arith.constant 0 : index
    %c0_54 = arith.constant 0 : index
    %68 = vector.load %arg10[%c0_52, %c0_53, %c0_54] : memref<1x8x32xbf16, #tpu.memory_space<vmem>>, vector<1x8x32xbf16>
    %69 = vector.shape_cast %68 : vector<1x8x32xbf16> to vector<8x32xbf16>
    %c0_55 = arith.constant 0 : index
    %c0_56 = arith.constant 0 : index
    %70 = vector.load %arg20[%c0_55, %c0_56] : memref<64x128xbf16, #tpu.memory_space<vmem>>, vector<32x128xbf16>
    %cst_57 = arith.constant dense<0.000000e+00> : vector<8x128xf32>
    %71 = tpu.matmul %69, %70, %cst_57 {dimension_numbers = #tpu.dot_dimension_numbers<[1], [0], [0], [1], [0, 0, 1, 1], [], []>} : vector<8x32xbf16>, vector<32x128xbf16>, vector<8x128xf32> -> vector<8x128xf32>
    %c0_58 = arith.constant 0 : index
    %c0_59 = arith.constant 0 : index
    %c0_60 = arith.constant 0 : index
    %72 = vector.load %arg11[%c0_58, %c0_59, %c0_60] : memref<1x8x1xf32, #tpu.memory_space<vmem>>, vector<1x8x1xf32>
    %73 = vector.shape_cast %72 : vector<1x8x1xf32> to vector<8x1xf32>
    %74 = vector.broadcast %73 : vector<8x1xf32> to vector<8x128xf32>
    %75 = arith.addf %71, %74 : vector<8x128xf32>
    %c0_61 = arith.constant 0 : index
    %c0_62 = arith.constant 0 : index
    %c0_63 = arith.constant 0 : index
    %76 = vector.load %arg12[%c0_61, %c0_62, %c0_63] : memref<1x8x32xbf16, #tpu.memory_space<vmem>>, vector<1x8x32xbf16>
    %77 = vector.shape_cast %76 : vector<1x8x32xbf16> to vector<8x32xbf16>
    %c32_64 = arith.constant 32 : index
    %c0_65 = arith.constant 0 : index
    %78 = vector.load %arg20[%c32_64, %c0_65] : memref<64x128xbf16, #tpu.memory_space<vmem>>, vector<32x128xbf16>
    %cst_66 = arith.constant dense<0.000000e+00> : vector<8x128xf32>
    %79 = tpu.matmul %77, %78, %cst_66 {dimension_numbers = #tpu.dot_dimension_numbers<[1], [0], [0], [1], [0, 0, 1, 1], [], []>} : vector<8x32xbf16>, vector<32x128xbf16>, vector<8x128xf32> -> vector<8x128xf32>
    %c0_67 = arith.constant 0 : index
    %c0_68 = arith.constant 0 : index
    %c0_69 = arith.constant 0 : index
    %80 = vector.load %arg13[%c0_67, %c0_68, %c0_69] : memref<1x8x1xf32, #tpu.memory_space<vmem>>, vector<1x8x1xf32>
    %81 = vector.shape_cast %80 : vector<1x8x1xf32> to vector<8x1xf32>
    %82 = vector.broadcast %81 : vector<8x1xf32> to vector<8x128xf32>
    %83 = arith.addf %79, %82 : vector<8x128xf32>
    %84 = arith.subf %3, %83 : vector<8x128xf32>
    %85 = vector.broadcast %23 : vector<1x128xf32> to vector<8x128xf32>
    %86 = arith.mulf %85, %84 : vector<8x128xf32>
    %cst_70 = arith.constant 0.000000e+00 : f32
    %87 = vector.broadcast %cst_70 : f32 to vector<8x128xf32>
    %88 = arith.subf %87, %75 : vector<8x128xf32>
    %89 = math.exp %88 : vector<8x128xf32>
    %90 = arith.mulf %86, %89 : vector<8x128xf32>
    %91 = arith.addf %25, %90 : vector<8x128xf32>
    %c0_71 = arith.constant 0 : index
    %c0_72 = arith.constant 0 : index
    %92 = vector.load %arg18[%c0_71, %c0_72] : memref<8x128xf32, #tpu.memory_space<vmem>>, vector<8x128xf32>
    %93 = vector.broadcast %23 : vector<1x128xf32> to vector<8x128xf32>
    %94 = arith.mulf %93, %75 : vector<8x128xf32>
    %95 = arith.subf %92, %94 : vector<8x128xf32>
    %c0_73 = arith.constant 0 : index
    %c0_74 = arith.constant 0 : index
    %96 = vector.load %arg18[%c0_73, %c0_74] : memref<8x128xf32, #tpu.memory_space<vmem>>, vector<8x128xf32>
    tpu.vector_store %arg18[%c0_73, %c0_74], %95 {strides = array<i32>} : memref<8x128xf32, #tpu.memory_space<vmem>>, vector<8x128xf32>,
    %97 = tpu.iota {dimensions = array<i32: 1>} : vector<1x128xi32>
    %c16_i32 = arith.constant 16 : i32
    %98 = vector.broadcast %c16_i32 : i32 to vector<1x128xi32>
    %99 = arith.cmpi slt, %97, %98 : vector<1x128xi32>
    %100 = arith.extui %99 : vector<1x128xi1> to vector<1x128xi32>
    %101 = arith.sitofp %100 : vector<1x128xi32> to vector<1x128xf32>
    %102 = vector.broadcast %101 : vector<1x128xf32> to vector<8x128xf32>
    %103 = arith.mulf %91, %102 : vector<8x128xf32>
    %cst_75 = arith.constant dense<0.000000e+00> : vector<8xf32>
    %104 = vector.multi_reduction <add>, %103, %cst_75 [1] : vector<8x128xf32> to vector<8xf32>
    %105 = vector.shape_cast %104 : vector<8xf32> to vector<8x1xf32>
    %cst_76 = arith.constant 6.250000e-02 : f32
    %106 = vector.broadcast %cst_76 : f32 to vector<8x1xf32>
    %107 = arith.mulf %105, %106 : vector<8x1xf32>
    %108 = vector.broadcast %107 : vector<8x1xf32> to vector<8x128xf32>
    %109 = arith.subf %103, %108 : vector<8x128xf32>
    %110 = vector.broadcast %101 : vector<1x128xf32> to vector<8x128xf32>
    %111 = arith.mulf %109, %110 : vector<8x128xf32>
    %112 = arith.mulf %111, %111 : vector<8x128xf32>
    %cst_77 = arith.constant dense<0.000000e+00> : vector<8xf32>
    %113 = vector.multi_reduction <add>, %112, %cst_77 [1] : vector<8x128xf32> to vector<8xf32>
    %114 = vector.shape_cast %113 : vector<8xf32> to vector<8x1xf32>
    %cst_78 = arith.constant 0.0666666701 : f32
    %115 = vector.broadcast %cst_78 : f32 to vector<8x1xf32>
    %116 = arith.mulf %114, %115 : vector<8x1xf32>
    %cst_79 = arith.constant 9.99999974E-6 : f32
    %117 = vector.broadcast %cst_79 : f32 to vector<8x1xf32>
    %118 = arith.addf %116, %117 : vector<8x1xf32>
    %119 = math.rsqrt %118 : vector<8x1xf32>
    %c0_80 = arith.constant 0 : index
    %c0_81 = arith.constant 0 : index
    %c0_82 = arith.constant 0 : index
    %120 = vector.load %arg14[%c0_80, %c0_81, %c0_82] : memref<1x8x1xf32, #tpu.memory_space<vmem>>, vector<1x8x1xf32>
    %121 = vector.shape_cast %120 : vector<1x8x1xf32> to vector<8x1xf32>
    %122 = vector.broadcast %119 : vector<8x1xf32> to vector<8x128xf32>
    %123 = arith.mulf %111, %122 : vector<8x128xf32>
    %124 = vector.broadcast %121 : vector<8x1xf32> to vector<8x128xf32>
    %125 = arith.mulf %124, %123 : vector<8x128xf32>
    %c0_83 = arith.constant 0 : index
    %c0_84 = arith.constant 0 : index
    %c0_85 = arith.constant 0 : index
    %126 = vector.load %arg16[%c0_83, %c0_84, %c0_85] : memref<1x8x1xf32, #tpu.memory_space<vmem>>, vector<1x8x1xf32>
    %127 = vector.shape_cast %126 : vector<1x8x1xf32> to vector<8x1xf32>
    %128 = vector.broadcast %127 : vector<8x1xf32> to vector<8x128xf32>
    %129 = arith.addf %125, %128 : vector<8x128xf32>
    %c0_86 = arith.constant 0 : index
    %c0_87 = arith.constant 0 : index
    %130 = vector.load %arg17[%c0_86, %c0_87] : memref<8x128xf32, #tpu.memory_space<vmem>>, vector<8x128xf32>
    tpu.vector_store %arg17[%c0_86, %c0_87], %129 {strides = array<i32>} : memref<8x128xf32, #tpu.memory_space<vmem>>, vector<8x128xf32>,
    %c0_88 = arith.constant 0 : index
    %c0_89 = arith.constant 0 : index
    %131 = vector.load %arg21[%c0_88, %c0_89] : memref<8x1xf32, #tpu.memory_space<vmem>>, vector<8x1xf32>
    %c0_90 = arith.constant 0 : index
    %c0_91 = arith.constant 0 : index
    %c0_92 = arith.constant 0 : index
    %132 = vector.load %arg15[%c0_90, %c0_91, %c0_92] : memref<1x8x1xf32, #tpu.memory_space<vmem>>, vector<1x8x1xf32>
    %133 = vector.shape_cast %132 : vector<1x8x1xf32> to vector<8x1xf32>
    %cst_93 = arith.constant 9.99999974E-6 : f32
    %134 = vector.broadcast %cst_93 : f32 to vector<8x1xf32>
    %135 = arith.addf %116, %134 : vector<8x1xf32>
    %136 = math.log %135 : vector<8x1xf32>
    %cst_94 = arith.constant 5.000000e-01 : f32
    %137 = vector.broadcast %cst_94 : f32 to vector<8x1xf32>
    %138 = arith.mulf %137, %136 : vector<8x1xf32>
    %139 = arith.subf %133, %138 : vector<8x1xf32>
    %140 = arith.addf %131, %139 : vector<8x1xf32>
    %c0_95 = arith.constant 0 : index
    %c0_96 = arith.constant 0 : index
    %141 = vector.load %arg21[%c0_95, %c0_96] : memref<8x1xf32, #tpu.memory_space<vmem>>, vector<8x1xf32>
    tpu.vector_store %arg21[%c0_95, %c0_96], %140 {strides = array<i32>} : memref<8x1xf32, #tpu.memory_space<vmem>>, vector<8x1xf32>,
    %c1_i32_97 = arith.constant 1 : i32
    %142 = arith.cmpi eq, %arg0, %c1_i32_97 : i32
    %143 = arith.extui %142 : i1 to i32
    %c0_i32_98 = arith.constant 0 : i32
    %144 = arith.cmpi ne, %143, %c0_i32_98 : i32
    scf.if %144 {
      %c0_99 = arith.constant 0 : index
      %c0_100 = arith.constant 0 : index
      %145 = vector.load %arg18[%c0_99, %c0_100] : memref<8x128xf32, #tpu.memory_space<vmem>>, vector<8x128xf32>
      %c0_101 = arith.constant 0 : index
      %c0_102 = arith.constant 0 : index
      %146 = vector.load %arg21[%c0_101, %c0_102] : memref<8x1xf32, #tpu.memory_space<vmem>>, vector<8x1xf32>
      %147 = vector.broadcast %146 : vector<8x1xf32> to vector<8x128xf32>
      %148 = arith.addf %145, %147 : vector<8x128xf32>
      %c0_103 = arith.constant 0 : index
      %c0_104 = arith.constant 0 : index
      %149 = vector.load %arg18[%c0_103, %c0_104] : memref<8x128xf32, #tpu.memory_space<vmem>>, vector<8x128xf32>
      tpu.vector_store %arg18[%c0_103, %c0_104], %148 {strides = array<i32>} : memref<8x128xf32, #tpu.memory_space<vmem>>, vector<8x128xf32>,
    } else {
    }
    return
  }
  func.func @transform_1(%arg0: i32) -> (i32, i32) {
    %c0_i32 = arith.constant 0 : i32
    %c0_i32_0 = arith.constant 0 : i32
    %c0_i32_1 = arith.constant 0 : i32
    return %c0_i32, %c0_i32_0 : i32, i32
  }
  func.func @transform_2(%arg0: i32) -> (i32, i32) {
    %c0_i32 = arith.constant 0 : i32
    %c0_i32_0 = arith.constant 0 : i32
    %c0_i32_1 = arith.constant 0 : i32
    return %c0_i32, %c0_i32_0 : i32, i32
  }
  func.func @transform_3(%arg0: i32) -> (i32, i32, i32) {
    %c0_i32 = arith.constant 0 : i32
    %c0_i32_0 = arith.constant 0 : i32
    %c0_i32_1 = arith.constant 0 : i32
    return %arg0, %c0_i32, %c0_i32_0 : i32, i32, i32
  }
  func.func @transform_4(%arg0: i32) -> (i32, i32, i32) {
    %c0_i32 = arith.constant 0 : i32
    %c0_i32_0 = arith.constant 0 : i32
    %c0_i32_1 = arith.constant 0 : i32
    return %arg0, %c0_i32, %c0_i32_0 : i32, i32, i32
  }
  func.func @transform_5(%arg0: i32) -> (i32, i32, i32, i32) {
    %c0_i32 = arith.constant 0 : i32
    %c0_i32_0 = arith.constant 0 : i32
    %c0_i32_1 = arith.constant 0 : i32
    %c0_i32_2 = arith.constant 0 : i32
    return %arg0, %c0_i32, %c0_i32_0, %c0_i32_1 : i32, i32, i32, i32
  }
  func.func @transform_6(%arg0: i32) -> (i32, i32, i32, i32) {
    %c0_i32 = arith.constant 0 : i32
    %c0_i32_0 = arith.constant 0 : i32
    %c0_i32_1 = arith.constant 0 : i32
    %c0_i32_2 = arith.constant 0 : i32
    return %arg0, %c0_i32, %c0_i32_0, %c0_i32_1 : i32, i32, i32, i32
  }
  func.func @transform_7(%arg0: i32) -> (i32, i32, i32, i32) {
    %c0_i32 = arith.constant 0 : i32
    %c0_i32_0 = arith.constant 0 : i32
    %c0_i32_1 = arith.constant 0 : i32
    %c0_i32_2 = arith.constant 0 : i32
    return %arg0, %c0_i32, %c0_i32_0, %c0_i32_1 : i32, i32, i32, i32
  }
  func.func @transform_8(%arg0: i32) -> (i32, i32, i32, i32) {
    %c0_i32 = arith.constant 0 : i32
    %c0_i32_0 = arith.constant 0 : i32
    %c0_i32_1 = arith.constant 0 : i32
    %c0_i32_2 = arith.constant 0 : i32
    return %arg0, %c0_i32, %c0_i32_0, %c0_i32_1 : i32, i32, i32, i32
  }
  func.func @transform_9(%arg0: i32) -> (i32, i32, i32) {
    %c0_i32 = arith.constant 0 : i32
    %c0_i32_0 = arith.constant 0 : i32
    %c0_i32_1 = arith.constant 0 : i32
    return %arg0, %c0_i32, %c0_i32_0 : i32, i32, i32
  }
  func.func @transform_10(%arg0: i32) -> (i32, i32, i32) {
    %c0_i32 = arith.constant 0 : i32
    %c0_i32_0 = arith.constant 0 : i32
    %c0_i32_1 = arith.constant 0 : i32
    return %arg0, %c0_i32, %c0_i32_0 : i32, i32, i32
  }
  func.func @transform_11(%arg0: i32) -> (i32, i32, i32) {
    %c0_i32 = arith.constant 0 : i32
    %c0_i32_0 = arith.constant 0 : i32
    %c0_i32_1 = arith.constant 0 : i32
    return %arg0, %c0_i32, %c0_i32_0 : i32, i32, i32
  }
  func.func @transform_12(%arg0: i32) -> (i32, i32, i32) {
    %c0_i32 = arith.constant 0 : i32
    %c0_i32_0 = arith.constant 0 : i32
    %c0_i32_1 = arith.constant 0 : i32
    return %arg0, %c0_i32, %c0_i32_0 : i32, i32, i32
  }
  func.func @transform_13(%arg0: i32) -> (i32, i32, i32) {
    %c0_i32 = arith.constant 0 : i32
    %c0_i32_0 = arith.constant 0 : i32
    %c0_i32_1 = arith.constant 0 : i32
    return %arg0, %c0_i32, %c0_i32_0 : i32, i32, i32
  }
  func.func @transform_14(%arg0: i32) -> (i32, i32, i32) {
    %c0_i32 = arith.constant 0 : i32
    %c0_i32_0 = arith.constant 0 : i32
    %c0_i32_1 = arith.constant 0 : i32
    return %arg0, %c0_i32, %c0_i32_0 : i32, i32, i32
  }
  func.func @transform_15(%arg0: i32) -> (i32, i32, i32) {
    %c0_i32 = arith.constant 0 : i32
    %c0_i32_0 = arith.constant 0 : i32
    %c0_i32_1 = arith.constant 0 : i32
    return %arg0, %c0_i32, %c0_i32_0 : i32, i32, i32
  }
  func.func @transform_16(%arg0: i32) -> (i32, i32) {
    %c0_i32 = arith.constant 0 : i32
    %c0_i32_0 = arith.constant 0 : i32
    %c0_i32_1 = arith.constant 0 : i32
    return %c0_i32, %c0_i32_0 : i32, i32
  }
  func.func @transform_17(%arg0: i32) -> (i32, i32) {
    %c0_i32 = arith.constant 0 : i32
    %c0_i32_0 = arith.constant 0 : i32
    %c0_i32_1 = arith.constant 0 : i32
    return %c0_i32, %c0_i32_0 : i32, i32
  }
}

</mosaic_0001>

<bundles_post_ra>
// kernel: tpu_custom_call.1
= control target key start
LH: loop header
LB: loop body
LE: loop exit
PB: predicated region body
PF: predicated region fallthrough
CT: control target
= control target key end

     0   :  { %s2180_s0 = inlined_call_operand.vmem [shape: f32[8,128], index: 0, kind: input, shape index: {}]   ;;  %s2181_s1 = inlined_call_operand.vmem [shape: bf16[4,128], index: 1, kind: input, shape index: {}]   ;;  %s2182_s2 = inlined_call_operand.vmem [shape: f32[1,128], index: 2, kind: input, shape index: {}]   ;;  %s2183_s3 = inlined_call_operand.vmem [shape: bf16[2,64,12], index: 3, kind: input, shape index: {}]   ;;  %s2184_s4 = inlined_call_operand.vmem [shape: f32[2,64,1], index: 4, kind: input, shape index: {}]   ;;  %s2185_s5 = inlined_call_operand.vmem [shape: bf16[2,1,32,32], index: 5, kind: input, shape index: {}]   ;;  %s2186_s6 = inlined_call_operand.vmem [shape: f32[2,1,32,1], index: 6, kind: input, shape index: {}]   ;;  %s2187_s7 = inlined_call_operand.vmem [shape: bf16[2,1,32,32], index: 7, kind: input, shape index: {}]   ;;  %s2188_s8 = inlined_call_operand.vmem [shape: f32[2,1,32,1], index: 8, kind: input, shape index: {}]   ;;  %s2189_s9 = inlined_call_operand.vmem [shape: bf16[2,8,32], index: 9, kind: input, shape index: {}]   ;;  %s2190_s10 = inlined_call_operand.vmem [shape: f32[2,8,1], index: 10, kind: input, shape index: {}]   ;;  %s2191_s11 = inlined_call_operand.vmem [shape: bf16[2,8,32], index: 11, kind: input, shape index: {}]   ;;  %s2192_s12 = inlined_call_operand.vmem [shape: f32[2,8,1], index: 12, kind: input, shape index: {}]   ;;  %s2193_s13 = inlined_call_operand.vmem [shape: f32[2,8,1], index: 13, kind: input, shape index: {}]   ;;  %s2194_s14 = inlined_call_operand.vmem [shape: f32[2,8,1], index: 14, kind: input, shape index: {}]   ;;  %s2195_s15 = inlined_call_operand.vmem [shape: f32[2,8,1], index: 15, kind: input, shape index: {}]   ;;  %s2196_s16 = inlined_call_operand.hbm [shape: f32[8,128], index: 16, kind: output, shape index: {0}]   ;;  %s2197_s17 = inlined_call_operand.hbm [shape: f32[8,128], index: 17, kind: output, shape index: {1}]  }
   0x1   :  { %2201 = sst [smem:[#allocation15_spill]] %s2180_s0 }
   0x2   :  { %2202 = sst [smem:[#allocation16_spill]] %s2181_s1 }
   0x3   :  { %2203 = sst [smem:[#allocation17_spill]] %s2182_s2 }
   0x4   :  { %2204 = sst [smem:[#allocation18_spill]] %s2183_s3 }
   0x5   :  { %2205 = sst [smem:[#allocation19_spill]] %s2184_s4 }
   0x6   :  { %2206 = sst [smem:[#allocation20_spill]] %s2185_s5 }
   0x7   :  { %2207 = sst [smem:[#allocation21_spill]] %s2186_s6 }
   0x8   :  { %2208 = sst [smem:[#allocation22_spill]] %s2187_s7 }
   0x9   :  { %2209 = sst [smem:[#allocation23_spill]] %s2188_s8 }
   0xa   :  { %2210 = sst [smem:[#allocation24_spill]] %s2189_s9 }
   0xb   :  { %2211 = sst [smem:[#allocation25_spill]] %s2196_s16 }
   0xc   :  { %2212 = sst [smem:[#allocation26_spill]] %s2197_s17 }
   0xd   :  { %23 = vsyncpa [#allocation7], 0 }
   0xe   :  { %24 = vsyncpa [#allocation9], 0  ;;  %s1954_s24 = smov 0  }
   0xf LB: > { %2213 = sst [smem:[#allocation14_spill]] %s1855_s24  ;;  %s1960_s25 = sadd.s32 4294967295, %s1855_s24   ;;  %s1855_s24 = sphi %s1954_s24, %s30_s24  }
  0x10   : > { %p1606_p0 = scmp.ge.s32.totalorder %s1855_s24, 1  ;;  %p571_p1 = scmp.lt.s32.totalorder %s1855_s24, 3 }
  0x12   : > { %p572_p2 = pnand %p1606_p0, %p571_p1 }
  0x13   : > { %p669_p3 = scmp.lt.s32.totalorder (!%p572_p2), %s1960_s25, 1  ;;  %s2214_s3 = sld [smem:[#allocation18_spill]] (!%p572_p2) }
  0x14   : > { %575 = sbr.rel (%p572_p2) target bundleno = 1318 (0x526), region = 80  ;;  %s2215_s4 = sld [smem:[#allocation19_spill]] (!%p572_p2) }
  0x15   : > { %s2216_s6 = sld [smem:[#allocation21_spill]] (!%p572_p2)  ;;  %s2217_s5 = sld [smem:[#allocation20_spill]] (!%p572_p2) }
  0x16   : > { %s2218_s7 = sld [smem:[#allocation22_spill]] (!%p572_p2)  ;;  %s2219_s8 = sld [smem:[#allocation23_spill]] (!%p572_p2) }
  0x17   : > { %s2220_s9 = sld [smem:[#allocation24_spill]] (!%p572_p2)  ;;  %p1626_p4 = scmp.ne.s32.totalorder (!%p572_p2), %s1960_s25, 0 }
  0x1b   : > { %s670_s26 = scalar_select %p669_p3, %s1960_s25, 1 }
  0x1d   : > { %s1658_s27 = sshll.u32 %s670_s26, 5  ;;  %s1659_s28 = sshll.u32 %s670_s26, 6 }
  0x1e   : > { %s1969_s30 = scalar_lea.vmem %s2214_s3, %s1658_s27  ;;  %s1974_s1 = scalar_lea.vmem %s2215_s4, %s1659_s28 }
  0x1f   : > { %s1660_s20 = sshll.u32 %s670_s26, 4  ;;  %s1979_s23 = scalar_lea.vmem %s2216_s6, %s1658_s27 }
  0x20   : > { %s1984_s16 = scalar_lea.vmem %s2217_s5, %s1660_s20  ;;  %s1989_s0 = scalar_lea.vmem %s2218_s7, %s1660_s20 }
  0x21   : > { %s1994_s28 = scalar_lea.vmem %s2219_s8, %s1658_s27  ;;  %s1619_s19 = sshll.u32 %s670_s26, 2 }
  0x22   : > { %s1999_s22 = scalar_lea.vmem %s2220_s9, %s1619_s19  ;;  %s2001_s6 = sshll.u32 %s670_s26, 3 }
  0x23   : > { %s2010_s20 = scalar_lea.vmem %s2191_s11, %s1619_s19  ;;  %s714_s18 = scalar_lea.vmem %s2192_s12, %s2001_s6 }
  0x24   : > { %s718_s5 = scalar_lea.vmem %s2193_s13, %s2001_s6  ;;  %s722_s24 = scalar_lea.vmem %s2194_s14, %s2001_s6 }
  0x25   : > { %s726_s2 = scalar_lea.vmem %s2195_s15, %s2001_s6  ;;  %731 = sbr.rel (%p1626_p4) target bundleno = 56 (0x38), region = 84 }
  0x26   : > { %s2221_s27 = sld [smem:[#allocation15_spill]] (!%p1626_p4) }
  0x2c   : > { %v764_v0 = vld [vmem:[%s2221_s27] sm:$0xff] }
  0x2d   : > { %765 = vst [vmem:[#allocation6] sm:$0xff] %v764_v0 }
  0x2e   : > { %773 = vsyncadd [#allocation5], 128 }
  0x2f   : > { %1843 = dma.done.wait [#allocation5], 128 }
  0x30   : > { %1844 = vsyncadd [#allocation5], 4294967168  ;;  %vm778_vm0 = vcmask 7168   ;;  %v1857_v1 = vmov 0.0   ;;  %s2222_s4 = sld [smem:[#allocation16_spill]] }
  0x31   : > { %777 = vst [vmem:[#allocation8] sm:$0xff] %v1857_v1  ;;  %779 = vst.msk [vmem:[#allocation4] sm:$0xff] %vm778_vm0, %v1857_v1 }
  0x36   : > { %v780_v2 = vld [vmem:[%s2222_s4] sm:$0x3] }
  0x37   : > { %781 = vst [vmem:[#allocation2 + $0x4] sm:$0x3] %v780_v2 }
  0x38 PF: > { %p783_p5 = scmp.lt.s32.totalorder %s1960_s25, 0  ;;  %s784_s8 = ssub.s32 0, %s1960_s25  ;;  %v1756_v3 = vld [vmem:[%s1969_s30] sm:$0xff]   ;;  %vm896_vm1 = vcmask 97280   ;;  %v1858_v5 = vmov 0   ;;  %v825_v6 = vld [vmem:[%s1974_s1 + $0x10] sm:$0xff]  ;;  %v805_v7 = vlaneseq }
  0x39   : > { %s1627_s9 = smin.u32 %s1960_s25, %s784_s8  ;;  %1685 = vmatprep.mubr.msk.bf16.mxu0 %vm896_vm1, %v1756_v3  ;;  %v823_v4 = vld [vmem:[%s1974_s1] sm:$0xff]  ;;  %1753 = vset.pattern.permute.xlu0 %v1858_v5  ;;  %v824_v8 = vld [vmem:[%s1974_s1 + $0x8] sm:$0xff]  ;;  %v826_v9 = vld [vmem:[%s1974_s1 + $0x18] sm:$0xff]  ;;  %s2223_s29 = sld [smem:[#allocation17_spill]]  ;;  %vm909_vm2 = vcmask 1045504   ;;  %vm1034_vm3 = vcmask 261120  }
  0x3a   : > { %s786_s26 = sand.u32 1, %s1627_s9   ;;  %1754 = vset.pattern.permute.xlu1 %v1858_v5  ;;  %833 = vperm.xlu0 %1753, %v823_v4   ;;  %v2045_v10 = vshrl.u32 %v805_v7, 7  ;;  %v827_v11 = vld [vmem:[%s1974_s1 + $0x20] sm:$0xff]  ;;  %v828_v13 = vld [vmem:[%s1974_s1 + $0x28] sm:$0xff]  ;;  %v829_v16 = vld [vmem:[%s1974_s1 + $0x30] sm:$0xff]  ;;  %s2224_s8 = scalar_lea.vmem %s2190_s10, %s2001_s6  ;;  %vm1860_vm4 = vmmov 0  }
  0x3b   : > { %s787_s21 = ssub.s32 0, %s786_s26  ;;  %843 = vperm.xlu1 %1754, %v825_v6   ;;  %v830_v17 = vld [vmem:[%s1974_s1 + $0x38] sm:$0xff]  ;;  %v2057_v21 = vld [vmem:[#allocation6] sm:$0xff]  ;;  %v1000_v22 = vld [vmem:[%s1979_s23] sm:$0xff]  ;;  %vm1362_vm6 = vcmask 7168   ;;  %p1650_p7 = scmp.ne.s32.totalorder %s1960_s25, 1 }
  0x3c   : > { %s2229_s21 = smov (!%p783_p5, %s787_s21), %s786_s26  ;;  %v807_v19 = vsub.s32 0, %v2045_v10  ;;  %v1001_v23 = vld [vmem:[%s1979_s23 + $0x8] sm:$0xff]  ;;  %v1002_v26 = vld [vmem:[%s1979_s23 + $0x10] sm:$0xff]  ;;  %v1003_v27 = vld [vmem:[%s1979_s23 + $0x18] sm:$0xff] }
  0x3d   : > { %p1629_p6 = scmp.lt.s32.totalorder %s2229_s21, 0  ;;  %s793_s17 = sadd.s32 2, %s2229_s21  ;;  %v1096_v29 = vld [vmem:[%s1994_s28] sm:$0xff]  ;;  %v1097_v30 = vld [vmem:[%s1994_s28 + $0x8] sm:$0xff]  ;;  %v1098_v31 = vld [vmem:[%s1994_s28 + $0x10] sm:$0xff] }
  0x3e   : > { %838 = vperm.xlu0 %1753, %v824_v8   ;;  %v1099_v32 = vld [vmem:[%s1994_s28 + $0x18] sm:$0xff]  ;;  %v1757_v35 = vld [vmem:[%s1969_s30 + $0x8] sm:$0xff]   ;;  %v1204_v36 = vld [vmem:[%s2224_s8] sm:$0xff] }
  0x3f   : > { %s2231_s17 = smov (!%p1629_p6, %s793_s17), %s2229_s21  ;;  %848 = vperm.xlu1 %1754, %v826_v9   ;;  %v798_v12 = vld [vmem:[%s2223_s29] sm:$0x1]  ;;  %v1758_v38 = vld [vmem:[%s1969_s30 + $0x10] sm:$0xff]   ;;  %v1759_v39 = vld [vmem:[%s1969_s30 + $0x18] sm:$0xff]  }
  0x40   : > { %s795_s19 = scvt.s32.f32 %s2231_s17  ;;  %v1256_v37 = vld [vmem:[%s714_s18] sm:$0xff] }
  0x41   : > { %v1760_v40 = vld [vmem:[%s1984_s16] sm:$0xff]  }
  0x42   : > { %s796_s3 = smul.f32 2.0, %s795_s19  ;;  %853 = vperm.xlu0 %1753, %v827_v11   ;;  %v801_v15 = vstv %s795_s19  ;;  %1697 = vmatprep.mubr.msk.bf16.mxu1 %vm1034_vm3, %v1760_v40 }
  0x43   : > { %858 = vperm.xlu1 %1754, %v828_v13  }
  0x44   : > { %s797_s4 = ssub.f32 1.0, %s796_s3 }
  0x46   : > { %v799_v14 = vstv %s797_s4  ;;  %863 = vperm.xlu0 %1753, %v829_v16   ;;  %v1762_v16 = vld [vmem:[%s1989_s0] sm:$0xff]  }
  0x47   : > { %v800_v18 = vmul.f32 %v799_v14, %v798_v12  ;;  %868 = vperm.xlu1 %1754, %v830_v17   ;;  %v1763_v17 = vld [vmem:[%s1989_s0 + $0x8] sm:$0xff]  }
  0x49   : > { %v2055_v20 = vadd.f32 %v801_v15, %v800_v18  ;;  %v1761_v15 = vld [vmem:[%s1984_s16 + $0x8] sm:$0xff]   ;;  %v1859_v18 = vmov 0.0  }
  0x4a   : > { %1006 = vperm.xlu0 %1753, %v1000_v22  }
  0x4b   : > { %v808_v24 = vrot.slane %v2055_v20, %v807_v19  ;;  %1011 = vperm.xlu1 %1754, %v1001_v23  }
  0x4d   : > { %v2065_v25 = vmul.f32 %v808_v24, %v2057_v21 }
  0x4e   : > { %1016 = vperm.xlu0 %1753, %v1002_v26  }
  0x4f   : > { %v811_v28 = vpack.c.bf16 %v2065_v25, %v2065_v25  ;;  %1021 = vperm.xlu1 %1754, %v1003_v27  }
  0x51   : > { %812 = vst [vmem:[#allocation2] sm:$0xf] %v811_v28 }
  0x52   : > { %1102 = vperm.xlu0 %1753, %v1096_v29  }
  0x53   : > { %1107 = vperm.xlu1 %1754, %v1097_v30  }
  0x56   : > { %1112 = vperm.xlu0 %1753, %v1098_v31  }
  0x57   : > { %1117 = vperm.xlu1 %1754, %v1099_v32  }
  0x58   : > { %v1755_v33 = vld [vmem:[#allocation2] sm:$0x3f]  }
  0x59   : > { %1725 = vmatprep.subr.msk.bf16.mxu0 %vm909_vm2, %v1755_v33  ;;  %v911_v34 = vsel %vm909_vm2, %v1755_v33, 0 }
  0x5a   : > { %1684 = vmatpush3.bf16.msra.mxu0 %v911_v34  ;;  %1207 = vperm.xlu0 %1753, %v1204_v36  }
  0x5b   : > { %1259 = vperm.xlu1 %1754, %v1256_v37   ;;  %1709 = vmatprep.subr.bf16.mxu0 %v1859_v18 }
  0x5d   : > { %1686 = vmatmul.mubr.msk.bf16.vlgmr.msra.gmra.mrb[0].mxu0 %vm896_vm1, %v1757_v35 }
  0x5e   : > { %1689 = vmatprep.mubr.msk.bf16.mxu0 %vm896_vm1, %v1758_v38 }
  0x65   : > { %1690 = vmatmul.mubr.msk.bf16.gmra.mrb[4].mxu0 %vm896_vm1, %v1759_v39 }
  0x66   : > { %1713 = vmatprep.mubr.msk.bf16.mxu0 %vm1860_vm4, %v1859_v18 }
  0xb9   : > { %v834_v41 = vpop.permute.xlu0 %833 }
  0xba   : > { %v844_v42 = vpop.permute.xlu1 %843 }
  0xbd   : > { %v839_v43 = vpop.permute.xlu0 %838 }
  0xbe   : > { %v849_v44 = vpop.permute.xlu1 %848 }
  0xc1   : > { %v854_v48 = vpop.permute.xlu0 %853 }
  0xc2   : > { %v859_v53 = vpop.permute.xlu1 %858 }
  0xc5   : > { %v864_v55 = vpop.permute.xlu0 %863 }
  0xc6   : > { %v869_v59 = vpop.permute.xlu1 %868 }
  0xc9   : > { %v1007_v22 = vpop.permute.xlu0 %1006 }
  0xca   : > { %v1012_v23 = vpop.permute.xlu1 %1011 }
  0xcd   : > { %v1017_v24 = vpop.permute.xlu0 %1016 }
  0xce   : > { %v1022_v26 = vpop.permute.xlu1 %1021 }
  0xd1   : > { %v1103_v30 = vpop.permute.xlu0 %1102 }
  0xd2   : > { %v1108_v35 = vpop.permute.xlu1 %1107 }
  0xd5   : > { %v1113_v37 = vpop.permute.xlu0 %1112 }
 0x130   : > { %v1687_v45 = vpop.f32.mrb[0].mxu0 }
 0x131   : > { %v956_v46 = vadd.f32 %v1687_v45, %v844_v42  ;;  %v947_v47 = vpop.f32.mrb[1].mxu0 }
 0x132   : > { %v948_v49 = vadd.f32 %v947_v47, %v834_v41  ;;  %v1688_v50 = vpop.f32.mrb[2].mxu0  ;;  %v1118_v41 = vpop.permute.xlu1 %1117 }
 0x133   : > { %1764 = vtanh.f32 %v956_v46  ;;  %v959_v51 = vadd.f32 %v1688_v50, %v849_v44  ;;  %v950_v52 = vpop.f32.mrb[3].mxu0 }
 0x134   : > { %1766 = vtanh.f32 %v948_v49  ;;  %v951_v54 = vadd.f32 %v950_v52, %v839_v43 }
 0x135   : > { %1768 = vtanh.f32 %v959_v51 }
 0x136   : > { %1770 = vtanh.f32 %v951_v54 }
 0x138   : > { %v1691_v56 = vpop.f32.mrb[4].mxu0 }
 0x139   : > { %v972_v57 = vadd.f32 %v1691_v56, %v864_v55  ;;  %v963_v58 = vpop.f32.mrb[5].mxu0 }
 0x13a   : > { %v964_v60 = vadd.f32 %v963_v58, %v854_v48  ;;  %v1692_v61 = vpop.f32.mrb[6].mxu0 }
 0x13b   : > { %v975_v62 = vadd.f32 %v1692_v61, %v869_v59  ;;  %v966_v63 = vpop.f32.mrb[7].mxu0  ;;  %v988_v2 = vmax.f32 %v972_v57, 0.0  ;;  %v1253_v59 = vld [vmem:[%s2010_s20] sm:$0xf]  ;;  %v803_v61 = vsub.f32 1.0, %v2055_v20  ;;  %v1260_v20 = vpop.permute.xlu1 %1259 }
 0x13c   : > { %v967_v0 = vadd.f32 %v966_v63, %v859_v53  ;;  %v986_v5 = vmax.f32 %v964_v60, 0.0  ;;  %v1201_v60 = vld [vmem:[%s1999_s22] sm:$0xf] }
 0x13d   : > { %v1765_v1 = vpop.eup %1764  ;;  %v989_v3 = vmax.f32 %v975_v62, 0.0  ;;  %v1208_v62 = vpop.permute.xlu0 %1207 }
 0x13e   : > { %v1767_v4 = vpop.eup %1766  ;;  %v987_v6 = vmax.f32 %v967_v0, 0.0  ;;  %v1310_v0 = vrot.slane %v803_v61, %v807_v19  ;;  %v1323_v19 = vand.u32 127, %v805_v7 }
 0x13f   : > { %v1769_v8 = vpop.eup %1768  ;;  %v991_v9 = vpack.c.bf16 %v989_v3, %v988_v2 }
 0x140   : > { %v1771_v11 = vpop.eup %1770  ;;  %v990_v12 = vpack.c.bf16 %v987_v6, %v986_v5  ;;  %v983_v13 = vpack.c.bf16 %v1769_v8, %v1765_v1  ;;  %v1318_v6 = vld [vmem:[#allocation8] sm:$0xff]  ;;  %vm1324_vm5 = vcmp.lt.s32.totalorder %v1323_v19, 16 }
 0x141   : > { %v982_v14 = vpack.c.bf16 %v1771_v11, %v1767_v4 }
 0x143   : > { %1693 = vmatprep.subr.bf16.mxu1 %v982_v14 }
 0x144   : > { %1694 = vmatpush3.bf16.msra.mxu1 %v982_v14 }
 0x145   : > { %1695 = vmatprep.subr.bf16.mxu1 %v983_v13 }
 0x148   : > { %1696 = vmatpush3.bf16.msra.mxu1 %v983_v13 }
 0x149   : > { %1701 = vmatprep.subr.bf16.mxu1 %v990_v12 }
 0x14b   : > { %1698 = vmatmul.mubr.msk.bf16.vlgmr.msra.gmra.mrb[0].mxu1 %vm1034_vm3, %v1761_v15 }
 0x14c   : > { %1702 = vmatpush3.bf16.msra.mxu1 %v990_v12  ;;  %1705 = vmatprep.mubr.msk.bf16.mxu1 %vm1034_vm3, %v1762_v16 }
 0x14d   : > { %1703 = vmatprep.subr.bf16.mxu1 %v991_v9 }
 0x150   : > { %1704 = vmatpush3.bf16.msra.mxu1 %v991_v9 }
 0x151   : > { %1717 = vmatprep.subr.bf16.mxu1 %v1859_v18 }
 0x153   : > { %1706 = vmatmul.mubr.msk.bf16.vlgmr.msra.gmra.mrb[4].mxu1 %vm1034_vm3, %v1763_v17 }
 0x154   : > { %1721 = vmatprep.mubr.msk.bf16.mxu1 %vm1860_vm4, %v1859_v18 }
 0x21e   : > { %v1699_v27 = vpop.f32.mrb[0].mxu1 }
 0x21f   : > { %v1084_v28 = vadd.f32 %v1699_v27, %v1017_v24  ;;  %v1075_v29 = vpop.f32.mrb[1].mxu1  ;;  %v1649_v24 = vsel %vm1324_vm5, 1.0, %v1859_v18 }
 0x220   : > { %v1076_v31 = vadd.f32 %v1075_v29, %v1007_v22  ;;  %v1700_v32 = vpop.f32.mrb[2].mxu1 }
 0x221   : > { %1772 = vtanh.f32 %v1084_v28  ;;  %v1087_v33 = vadd.f32 %v1700_v32, %v1022_v26  ;;  %v1078_v34 = vpop.f32.mrb[3].mxu1  ;;  %v1339_v28 = vld [vmem:[%s718_s5] sm:$0xff] }
 0x222   : > { %1774 = vtanh.f32 %v1076_v31  ;;  %v1079_v36 = vadd.f32 %v1078_v34, %v1012_v23 }
 0x223   : > { %1776 = vtanh.f32 %v1087_v33 }
 0x224   : > { %1778 = vtanh.f32 %v1079_v36 }
 0x226   : > { %v1707_v38 = vpop.f32.mrb[4].mxu1 }
 0x227   : > { %v1179_v39 = vadd.f32 %v1707_v38, %v1113_v37  ;;  %v1170_v40 = vpop.f32.mrb[5].mxu1 }
 0x228   : > { %v1171_v42 = vadd.f32 %v1170_v40, %v1103_v30  ;;  %v1708_v43 = vpop.f32.mrb[6].mxu1 }
 0x229   : > { %v1182_v44 = vadd.f32 %v1708_v43, %v1118_v41  ;;  %v1173_v45 = vpop.f32.mrb[7].mxu1  ;;  %v1195_v48 = vmax.f32 %v1179_v39, 0.0  ;;  %v1356_v39 = vld [vmem:[%s722_s24] sm:$0xff]  ;;  %v1355_v43 = vld [vmem:[#allocation4] sm:$0xff] }
 0x22a   : > { %v1174_v46 = vadd.f32 %v1173_v45, %v1108_v35  ;;  %v1193_v51 = vmax.f32 %v1171_v42, 0.0 }
 0x22b   : > { %v1773_v47 = vpop.eup %1772  ;;  %v1196_v49 = vmax.f32 %v1182_v44, 0.0 }
 0x22c   : > { %v1775_v50 = vpop.eup %1774  ;;  %v1194_v52 = vmax.f32 %v1174_v46, 0.0 }
 0x22d   : > { %v1777_v53 = vpop.eup %1776  ;;  %v1198_v54 = vpack.c.bf16 %v1196_v49, %v1195_v48  ;;  %v1861_v48 = vmov (!%p1650_p7), 0  }
 0x22e   : > { %v1779_v55 = vpop.eup %1778  ;;  %v1197_v56 = vpack.c.bf16 %v1194_v52, %v1193_v51  ;;  %v1190_v57 = vpack.c.bf16 %v1777_v53, %v1773_v47 }
 0x22f   : > { %v1189_v58 = vpack.c.bf16 %v1779_v55, %v1775_v50 }
 0x230   : > { %1718 = vmatpush3.bf16.msra.mxu1 %v1197_v56 }
 0x231   : > { %1710 = vmatpush3.bf16.msra.mxu0 %v1189_v58  ;;  %1719 = vmatprep.subr.bf16.mxu1 %v1859_v18 }
 0x232   : > { %1711 = vmatprep.subr.bf16.mxu0 %v1859_v18 }
 0x234   : > { %1720 = vmatpush3.bf16.msra.mxu1 %v1198_v54 }
 0x235   : > { %1712 = vmatpush3.bf16.msra.mxu0 %v1190_v57 }
 0x237   : > { %1722 = vmatmul.mubr.msk.bf16.vlgmr.msra.gmra.mrb[8].mxu1 %vm1034_vm3, %v1253_v59 }
 0x238   : > { %1714 = vmatmul.mubr.msk.bf16.vlgmr.msra.gmra.mrb[8].mxu0 %vm1034_vm3, %v1201_v60 }
 0x30a   : > { %v1299_v63 = vpop.f32.mrb[8].mxu1 }
 0x30b   : > { %v1247_v1 = vpop.f32.mrb[8].mxu0  ;;  %v1723_v2 = vpop.f32.mrb[9].mxu1  ;;  %v1300_v16 = vadd.f32 %v1299_v63, %v1260_v20 }
 0x30c   : > { %v1248_v3 = vadd.f32 %v1247_v1, %v1208_v62  ;;  %v1715_v4 = vpop.f32.mrb[9].mxu0  ;;  %v1302_v5 = vpop.f32.mrb[10].mxu1 }
 0x30d   : > { %v1250_v8 = vpop.f32.mrb[10].mxu0  ;;  %v1724_v9 = vpop.f32.mrb[11].mxu1  ;;  %v1305_v10 = vsub.f32 %v2057_v21, %v1300_v16 }
 0x30e   : > { %v1313_v11 = vsub.f32 0.0, %v1248_v3  ;;  %v1319_v12 = vmul.f32 %v1310_v0, %v1248_v3  ;;  %v1716_v13 = vpop.f32.mrb[11].mxu0 }
 0x30f   : > { %v1312_v17 = vmul.f32 %v1310_v0, %v1305_v10 }
 0x310   : > { %v1314_v14 = vmul.f32 1.442695, %v1313_v11  ;;  %v1320_v15 = vsub.f32 %v1318_v6, %v1319_v12 }
 0x312   : > { %1780 = vpow2.f32 %v1314_v14  ;;  %1321 = vst [vmem:[#allocation8] sm:$0xff] %v1320_v15 }
 0x319   : > { %v1368_v49 = vld [vmem:[#allocation8] sm:$0xff] (!%p1650_p7) }
 0x31c   : > { %v1781_v22 = vpop.eup %1780 }
 0x31d   : > { %v1316_v23 = vmul.f32 %v1781_v22, %v1312_v17 }
 0x31f   : > { %v1317_v26 = vadd.f32 %v1316_v23, %v2065_v25  ;;  %v1347_v25 = vld [vmem:[%s726_s2] sm:$0xff] }
 0x321   : > { %v1327_v27 = vmul.f32 %v1649_v24, %v1317_v26 }
 0x323   : > { %1328 = vadd.xlane.f32.xlu0 %v1327_v27 }
 0x339   : > { %1343 = vperm.xlu0 %1753, %v1339_v28  }
 0x33d   : > { %1786 = vset.pattern.permute.xlu0 (!%p1650_p7), %v1861_v48 }
 0x3b0   : > { %v1329_v21 = vpop.xlane.xlu0 %1328 }
 0x3b1   : > { %v1330_v29 = vmul.f32 0.0625, %v1329_v21 }
 0x3b3   : > { %v1331_v7 = vsub.f32 %v1327_v27, %v1330_v29 }
 0x3b5   : > { %v1332_v30 = vmul.f32 %v1649_v24, %v1331_v7 }
 0x3b7   : > { %v1333_v31 = vmul.f32 %v1332_v30, %v1332_v30 }
 0x3b8   : > { %v1344_v37 = vpop.permute.xlu0 %1343 }
 0x3b9   : > { %1334 = vadd.xlane.f32.xlu1 %v1333_v31 }
 0x3ca   : > { %1350 = vperm.xlu1 %1754, %v1347_v25  }
 0x446   : > { %v1335_v18 = vpop.xlane.xlu1 %1334 }
 0x447   : > { %v1336_v32 = vmul.f32 0.06666667, %v1335_v18 }
 0x449   : > { %v1337_v33 = vadd.f32 1e-05, %v1336_v32 }
 0x44a   : > { %v1351_v42 = vpop.permute.xlu1 %1350 }
 0x44b   : > { %1782 = vrsqrt.f32 %v1337_v33 }
 0x44c   : > { %1784 = vlog2.f32 %v1337_v33 }
 0x455   : > { %v1783_v34 = vpop.eup %1782 }
 0x456   : > { %v1785_v35 = vpop.eup %1784  ;;  %v1340_v36 = vmul.f32 %v1783_v34, %v1332_v30 }
 0x457   : > { %v1358_v38 = vmul.f32 0.6931472, %v1785_v35 }
 0x458   : > { %v1346_v40 = vmul.f32 %v1344_v37, %v1340_v36 }
 0x459   : > { %v1359_v41 = vmul.f32 0.5, %v1358_v38  ;;  %1367 = sbr.rel (%p1650_p7) target bundleno = 1258 (0x4ea), region = 122 }
 0x45a   : > { %v1353_v44 = vadd.f32 %v1351_v42, %v1346_v40 }
 0x45b   : > { %v1360_v45 = vsub.f32 %v1356_v39, %v1359_v41 }
 0x45c   : > { %1354 = vst [vmem:[#allocation6] sm:$0xff] %v1353_v44 }
 0x45d   : > { %v1361_v46 = vadd.f32 %v1360_v45, %v1355_v43 }
 0x45f   : > { %1363 = vst.msk [vmem:[#allocation4] sm:$0xff] %vm1362_vm6, %v1361_v46 }
 0x466   : > { %v1369_v47 = vld [vmem:[#allocation4] sm:$0xff] }
 0x467   : > { %1372 = vperm.xlu0 %1786, %v1369_v47  }
 0x4e6   : > { %v1373_v50 = vpop.permute.xlu0 %1372 }
 0x4e7   : > { %v1375_v51 = vadd.f32 %v1373_v50, %v1368_v49 }
 0x4e9   : > { %1376 = vst [vmem:[#allocation8] sm:$0xff] %v1375_v51 }
 0x4ea PF: > { %p1734_p8 = scmp.eq.s32.totalorder %s1960_s25, 1  ;;  %s1862_s6 = smov [#allocation6]  }
 0x4eb   : > { %s1384_s2 = sshll.u32 %s1862_s6, 4  ;;  %s1863_s20 = smov [#allocation8]   ;;  %s1385_s2 = int_to_ptr.vmem [resolvable:$true] %s1384_s2 }
 0x4ec   : > { %s1395_s18 = sshll.u32 %s1863_s20, 4  ;;  %s1787_s24 = scalar_lea.vmem %s1385_s2, 128  ;;  %s1396_s18 = int_to_ptr.vmem [resolvable:$true] %s1395_s18 }
 0x4ed   : > { %p1788_p9 = scmp.ne.s32.totalorder %s1385_s2, %s1787_s24  ;;  %p1794_p12 = scmp.lt.s32.totalorder %s1385_s2, %s1385_s2 }
 0x4ee   : > { %p1795_p13 = scmp.lt.s32.totalorder %s1787_s24, %s1787_s24 }
 0x4ef   : > { %p1789_p10 = pnand %p1788_p9, %p1734_p8 }
 0x4f0   : > { %p1796_p0 = por %p1795_p13, %p1794_p12 }
 0x4f1   : > { %p1790_p11 = pneg %p1789_p10 }
 0x4f3   : > { %p1797_p1 = pnand %p1796_p0, %p1790_p11 }
 0x4f5   : > { %1800 = shalt.err (!%p1797_p1)
}
 0x4f6   : > { %s2225_s19 = sld [smem:[#allocation25_spill]] }
 0x4fc   : > { %s1801_s3 = scalar_lea.hbm %s2225_s19, 128 }
 0x4fd   : > { %p1802_p2 = scmp.ne.s32.totalorder %s2225_s19, %s1801_s3  ;;  %p1807_p5 = scmp.lt.u32.totalorder %s1801_s3, %s2225_s19 }
 0x4ff   : > { %p1803_p3 = pnand %p1802_p2, %p1734_p8 }
 0x501   : > { %p1804_p4 = pneg %p1803_p3 }
 0x503   : > { %p1809_p6 = pnand %p1807_p5, %p1804_p4 }
 0x505   : > { %1812 = shalt.err (!%p1809_p6)
}
 0x506   : > { %1727 = dma.vmem_to_hbm [thread:$0]  (%p1734_p8), %s1385_s2, 128, %s2225_s19, [#allocation7]  }
 0x507   : > { %s1813_s8 = scalar_lea.vmem %s1396_s18, 128  ;;  %p1820_p11 = scmp.lt.s32.totalorder %s1396_s18, %s1396_s18 }
 0x508   : > { %p1814_p7 = scmp.ne.s32.totalorder %s1396_s18, %s1813_s8  ;;  %p1821_p12 = scmp.lt.s32.totalorder %s1813_s8, %s1813_s8 }
 0x50a   : > { %p1815_p9 = pnand %p1814_p7, %p1734_p8  ;;  %p1822_p13 = por %p1821_p12, %p1820_p11 }
 0x50c   : > { %p1816_p10 = pneg %p1815_p9 }
 0x50e   : > { %p1823_p0 = pnand %p1822_p13, %p1816_p10 }
 0x510   : > { %1826 = shalt.err (!%p1823_p0)
}
 0x511   : > { %s2226_s16 = sld [smem:[#allocation26_spill]] }
 0x517   : > { %s1827_s30 = scalar_lea.hbm %s2226_s16, 128 }
 0x518   : > { %p1828_p1 = scmp.ne.s32.totalorder %s2226_s16, %s1827_s30  ;;  %p1833_p4 = scmp.lt.u32.totalorder %s1827_s30, %s2226_s16 }
 0x51a   : > { %p1829_p2 = pnand %p1828_p1, %p1734_p8 }
 0x51c   : > { %p1830_p3 = pneg %p1829_p2 }
 0x51e   : > { %p1835_p5 = pnand %p1833_p4, %p1830_p3 }
 0x520   : > { %1838 = shalt.err (!%p1835_p5)
}
 0x521   : > { %1729 = dma.vmem_to_hbm [thread:$0]  (%p1734_p8), %s1396_s18, 128, %s2226_s16, [#allocation9]  }
 0x522   : > { %1846 = dma.done.wait (%p1734_p8), [#allocation7], 128  }
 0x523   : > { %1848 = vsyncadd (%p1734_p8), [#allocation7], 4294967168 }
 0x524   : > { %1850 = dma.done.wait (%p1734_p8), [#allocation9], 128  }
 0x525   : > { %1852 = vsyncadd (%p1734_p8), [#allocation9], 4294967168 }
 0x526 PF: > { %s2227_s20 = sld [smem:[#allocation14_spill]] }
 0x52c   : > { %s30_s24 = sadd.s32 1, %s2227_s20  }
 0x52d   : > { %p27_p6 = scmp.ge.s32.totalorder %s30_s24, 4  }
 0x52f   :  { %29 = sbr.rel (!%p27_p6) target bundleno = 15 (0xf), region = 201 }
 0x536   :  { %1412 = vsyncpa [#allocation7], 1 }
 0x537   :  { %1414 = vsyncpa [#allocation7 + $0x1], 1 }
 0x538   :  { %1415 = vsyncpa [#allocation9], 1 }
 0x539   :  { %1416 = vsyncmov [#allocation5] }
 0x53c   :  { %s1417_s18 = vpop.sfrf %1416 }
 0x53d   :  { %p1657_p7 = scmp.ne.s32.totalorder %s1417_s18, 0 }
 0x53f   :  { %1421 = shalt.err (%p1657_p7)  }

</bundles_post_ra>
